<compile_context>
chip_gen: v5e
topology: v5e:2x2
jax: 0.10.0
libtpu: 0.0.40
codegen_flags: <defaults>
</compile_context>

<pallas_src>
import numpy as np
import jax
import jax.numpy as jnp
from jax.experimental import pallas as pl
from jax.experimental.pallas import tpu as pltpu


def get_positional_embeddings(sequence_length, d):
    """Sin/cos positional embeddings, identical to the PyTorch helper."""
    position = jnp.arange(0, sequence_length, dtype=jnp.float32)[:, None]
    div_term = jnp.exp(jnp.arange(0, d, 2, dtype=jnp.float32)
                       * -(np.log(10000.0) / d))
    sin_part = jnp.sin(position * div_term)  # (S, d/2) -> even columns
    cos_part = jnp.cos(position * div_term)  # (S, d/2) -> odd columns
    result = jnp.zeros((sequence_length, d), dtype=jnp.float32)
    result = result.at[:, 0::2].set(sin_part)
    result = result.at[:, 1::2].set(cos_part)
    return result


def _round_up(v, m):
    return ((v + m - 1) // m) * m


def _pad_axis(a, target, axis):
    pad = target - a.shape[axis]
    if pad <= 0:
        return a
    widths = [(0, 0)] * a.ndim
    widths[axis] = (0, pad)
    return jnp.pad(a, widths)


def _patch_embed_kernel(p_ref, w_ref, pos_ref, o_ref):
    # p_ref  : (TM, Dp)  bf16 patch rows for this M-tile
    # w_ref  : (Dp, Ep)  bf16 flattened conv weight (zero-padded)
    # pos_ref: (TM, Ep)  f32  positional embedding + conv bias per tile row
    # o_ref  : (TM, Ep)  f32
    acc = jnp.dot(p_ref[...], w_ref[...], preferred_element_type=jnp.float32)
    o_ref[...] = (acc + pos_ref[...]).astype(o_ref.dtype)


def patch_embedding_forward(x, conv_w, conv_b, class_token, pos_emb, patch_size):
    """x: (B, 3, H, W) float32. Returns (B, num_patches + 1, E) float32."""
    B, C, H, W = x.shape
    P = patch_size
    assert H % P == 0 and W % P == 0, "img_size must be divisible by patch_size"
    Hp, Wp = H // P, W // P
    N = Hp * Wp                        # num_patches
    E = conv_w.shape[0]                # emb_size
    D = C * P * P                      # flattened patch dim
    M = B * N                          # flattened (batch, patch) rows

    Dp = _round_up(D, 128)             # lane-dense contraction dim
    Ep = _round_up(E, 128)             # lane-dense output dim

    # --- glue: patchify in (c, kh, kw)-major order, flatten (B, N) -> M -----
    # TODO(synk): at ViT scale, fuse this patchify into the kernel (NHWC strip
    # reads via the BlockSpec index_map) to avoid an extra (M, Dp) HBM pass.
    patches = x.reshape(B, C, Hp, P, Wp, P)
    patches = patches.transpose(0, 2, 4, 1, 3, 5)             # (B, Hp, Wp, C, P, P)
    patches = patches.reshape(M, D)                           # (M, D)
    patches = _pad_axis(patches, Dp, 1).astype(jnp.bfloat16)  # (M, Dp) bf16

    w_flat = conv_w.reshape(E, D).T                           # (D, E), (c,kh,kw)-major
    w_flat = _pad_axis(_pad_axis(w_flat, Dp, 0), Ep, 1).astype(jnp.bfloat16)

    # Fold conv bias into the positional-embedding rows for patch positions.
    pos_pb = pos_emb[1:] + conv_b[None, :]                    # (N, E) f32
    pos_pb = _pad_axis(pos_pb, Ep, 1)                         # (N, Ep)

    # Rows per grid step: a multiple of N (so the pos tile repeats cleanly
    # under a constant index_map) and of 8 (sublane alignment); target ~512.
    if N % 8 == 0:
        per_tile = max(1, min(B, max(1, 512 // N)))
    else:
        per_tile = B                   # full-extent block: no (8,128) constraint
    TM = per_tile * N
    pos_tile = jnp.tile(pos_pb, (per_tile, 1))                # (TM, Ep)

    grid = (pl.cdiv(M, TM),)

    out = pl.pallas_call(
        _patch_embed_kernel,
        out_shape=jax.ShapeDtypeStruct((M, Ep), jnp.float32),
        grid=grid,
        in_specs=[
            pl.BlockSpec((TM, Dp), lambda i: (i, 0)),
            # Weight / pos blocks are grid-invariant; at ViT-scale weights,
            # single-buffer them (pipeline_mode=pl.Buffered(1) or a VMEM
            # scratch) to reclaim VMEM for a larger TM.
            pl.BlockSpec((Dp, Ep), lambda i: (0, 0)),
            pl.BlockSpec((TM, Ep), lambda i: (0, 0)),
        ],
        out_specs=pl.BlockSpec((TM, Ep), lambda i: (i, 0)),
        compiler_params=pltpu.CompilerParams(
            dimension_semantics=("parallel",)),
    )(patches, w_flat, pos_tile)

    proj = out[:, :E].reshape(B, N, E)                        # strip lane padding

    # --- glue: prepend class token (it gets pos_emb row 0) ------------------
    cls = jnp.broadcast_to(class_token, (B, 1, E)) + pos_emb[0][None, None, :]
    return jnp.concatenate([cls, proj], axis=1)               # (B, N+1, E)


if __name__ == "__main__":
    # Small shapes consistent with the module: img 16x16, patch 4, emb 32.
    img_size, patch_size, emb_size = 16, 4, 32
    B, C = 2, 3
    num_patches = (img_size // patch_size) ** 2               # 16

    key = jax.random.PRNGKey(0)
    kx, kw, kb, kc = jax.random.split(key, 4)

    x = jax.random.normal(kx, (B, C, img_size, img_size), dtype=jnp.float32)
    conv_w = jax.random.normal(kw, (emb_size, C, patch_size, patch_size),
                               dtype=jnp.float32) * 0.02
    conv_b = jax.random.normal(kb, (emb_size,), dtype=jnp.float32) * 0.02
    class_token = jax.random.normal(kc, (1, 1, emb_size), dtype=jnp.float32)
    pos_emb = get_positional_embeddings(num_patches + 1, emb_size)

    out = patch_embedding_forward(x, conv_w, conv_b, class_token, pos_emb,
                                  patch_size)
    out = jax.block_until_ready(out)

    # Reference in plain f32 JAX (strided conv as patch matmul + cls + pos).
    Hp = img_size // patch_size
    patches_ref = x.reshape(B, C, Hp, patch_size, Hp, patch_size)
    patches_ref = patches_ref.transpose(0, 2, 4, 1, 3, 5).reshape(
        B, num_patches, C * patch_size * patch_size)
    proj_ref = jnp.einsum("bnd,ed->bne", patches_ref,
                          conv_w.reshape(emb_size, -1)) + conv_b
    cls_ref = jnp.broadcast_to(class_token, (B, 1, emb_size))
    ref = jnp.concatenate([cls_ref, proj_ref], axis=1) + pos_emb[None]

    assert out.shape == (B, num_patches + 1, emb_size)
    # Kernel uses bf16 MXU operands with f32 accumulation -> compare against
    # the f32 reference with a bf16-appropriate tolerance.
    assert np.allclose(np.asarray(out), np.asarray(ref), atol=2e-2, rtol=2e-2)
    print("KERNEL_OK")
</pallas_src>

<mosaic_0001>
module attributes {stable_mosaic.version = 11 : i64} {
  func.func @_patch_embed_kernel(%arg0: i32, %arg1: memref<32x128xbf16, #tpu.memory_space<vmem>>, %arg2: memref<128x128xbf16, #tpu.memory_space<vmem>>, %arg3: memref<32x128xf32, #tpu.memory_space<vmem>>, %arg4: memref<32x128xf32, #tpu.memory_space<vmem>>) attributes {dimension_semantics = [#tpu.dimension_semantics<parallel>], iteration_bounds = array<i64: 1>, scalar_prefetch = 0 : i64, scratch_operands = 0 : i64, tpu.core_type = #tpu.core_type<tc>, window_params = [{transform_indices = @transform_0, window_bounds = array<i64: 32, 128>}, {pipeline_mode = #tpu.pipeline_mode<synchronous>, transform_indices = @transform_1, window_bounds = array<i64: 128, 128>}, {pipeline_mode = #tpu.pipeline_mode<synchronous>, transform_indices = @transform_2, window_bounds = array<i64: 32, 128>}, {transform_indices = @transform_3, window_bounds = array<i64: 32, 128>}]} {
    %c0 = arith.constant 0 : index
    %c0_0 = arith.constant 0 : index
    %0 = vector.load %arg1[%c0, %c0_0] : memref<32x128xbf16, #tpu.memory_space<vmem>>, vector<32x128xbf16>
    %c0_1 = arith.constant 0 : index
    %c0_2 = arith.constant 0 : index
    %1 = vector.load %arg2[%c0_1, %c0_2] : memref<128x128xbf16, #tpu.memory_space<vmem>>, vector<128x128xbf16>
    %cst = arith.constant dense<0.000000e+00> : vector<32x128xf32>
    %2 = tpu.matmul %0, %1, %cst {dimension_numbers = #tpu.dot_dimension_numbers<[1], [0], [0], [1], [0, 0, 1, 1], [], []>} : vector<32x128xbf16>, vector<128x128xbf16>, vector<32x128xf32> -> vector<32x128xf32>
    %c0_3 = arith.constant 0 : index
    %c0_4 = arith.constant 0 : index
    %3 = vector.load %arg3[%c0_3, %c0_4] : memref<32x128xf32, #tpu.memory_space<vmem>>, vector<32x128xf32>
    %4 = arith.addf %2, %3 : vector<32x128xf32>
    %c0_5 = arith.constant 0 : index
    %c0_6 = arith.constant 0 : index
    %5 = vector.load %arg4[%c0_5, %c0_6] : memref<32x128xf32, #tpu.memory_space<vmem>>, vector<32x128xf32>
    tpu.vector_store %arg4[%c0_5, %c0_6], %4 {strides = array<i32>} : memref<32x128xf32, #tpu.memory_space<vmem>>, vector<32x128xf32>,
    return
  }
  func.func @transform_0(%arg0: i32) -> (i32, i32) {
    %c0_i32 = arith.constant 0 : i32
    %c0_i32_0 = arith.constant 0 : i32
    return %arg0, %c0_i32 : i32, i32
  }
  func.func @transform_1(%arg0: i32) -> (i32, i32) {
    %c0_i32 = arith.constant 0 : i32
    %c0_i32_0 = arith.constant 0 : i32
    %c0_i32_1 = arith.constant 0 : i32
    return %c0_i32, %c0_i32_0 : i32, i32
  }
  func.func @transform_2(%arg0: i32) -> (i32, i32) {
    %c0_i32 = arith.constant 0 : i32
    %c0_i32_0 = arith.constant 0 : i32
    %c0_i32_1 = arith.constant 0 : i32
    return %c0_i32, %c0_i32_0 : i32, i32
  }
  func.func @transform_3(%arg0: i32) -> (i32, i32) {
    %c0_i32 = arith.constant 0 : i32
    %c0_i32_0 = arith.constant 0 : i32
    return %arg0, %c0_i32 : i32, i32
  }
}

</mosaic_0001>

<bundles_post_ra>
// kernel: tpu_custom_call.1
= control target key start
LH: loop header
LB: loop body
LE: loop exit
PB: predicated region body
PF: predicated region fallthrough
CT: control target
= control target key end

     0   :  { %8 = vsyncpa [#allocation3], 0  ;;  %s403_s0 = inlined_call_operand.hbm [shape: bf16[32,128], index: 0, kind: input, shape index: {}]   ;;  %s404_s1 = inlined_call_operand.hbm [shape: bf16[128,128], index: 1, kind: input, shape index: {}]   ;;  %s405_s2 = inlined_call_operand.hbm [shape: f32[32,128], index: 2, kind: input, shape index: {}]   ;;  %s406_s3 = inlined_call_operand.hbm [shape: f32[32,128], index: 3, kind: output, shape index: {}]  }
   0x1   :  { %9 = vsyncpa [#allocation6], 0 }
   0x2   :  { %10 = vsyncpa [#allocation4], 0  ;;  %s28_s14 = sshll.u32 %s404_s1, 4  ;;  %s357_s15 = smov [#allocation5]   ;;  %s29_s14 = int_to_ptr.hbm [resolvable:$true] %s28_s14 }
   0x3   :  { %s30_s16 = sshll.u32 %s357_s15, 4  ;;  %s15_s19 = sshll.u32 %s403_s0, 4  ;;  %s31_s16 = int_to_ptr.vmem [resolvable:$true] %s30_s16  ;;  %s16_s19 = int_to_ptr.hbm [resolvable:$true] %s15_s19 }
   0x4   :  { %s358_s20 = smov 64   ;;  %s359_s21 = smov 4  }
   0x5   :  { %36 = dma.hbm_to_vmem [thread:$0]  %s29_s14, 1024, %s31_s16, [#allocation6], %s358_s20, %s358_s20, %s359_s21  }
   0x6   :  { %s360_s22 = smov [#allocation2]   ;;  %s41_s26 = sshll.u32 %s405_s2, 4  ;;  %s42_s26 = int_to_ptr.hbm [resolvable:$true] %s41_s26 }
   0x7   :  { %s17_s23 = sshll.u32 %s360_s22, 4  ;;  %s361_s1 = smov [#allocation7]   ;;  %s18_s23 = int_to_ptr.vmem [resolvable:$true] %s17_s23 }
   0x8   :  { %23 = dma.hbm_to_vmem [thread:$0]  %s16_s19, 256, %s18_s23, [#allocation3], %s358_s20, %s358_s20, %s359_s21  }
   0x9   :  { %s43_s27 = sshll.u32 %s361_s1, 4  ;;  %s362_s28 = smov 128   ;;  %s44_s27 = int_to_ptr.vmem [resolvable:$true] %s43_s27 }
   0xa   :  { %s363_s29 = smov 8  }
   0xb   :  { %49 = dma.hbm_to_vmem [thread:$0]  %s42_s26, 512, %s44_s27, [#allocation6], %s362_s28, %s362_s28, %s363_s29  }
   0xc   :  { %351 = dma.done.wait [#allocation3], 256  }
   0xd   :  { %352 = vsyncadd [#allocation3], 4294967040 }
   0xe   :  { %353 = dma.done.wait [#allocation6], 1536  }
   0xf   :  { %354 = vsyncadd [#allocation6], 4294965760  ;;  %v238_v0 = vld [vmem:[#allocation5 + $0x38] sm:$0xff]  ;;  %v237_v1 = vld [vmem:[#allocation5 + $0x30] sm:$0xff]  ;;  %s364_s0 = smov [#allocation8]   ;;  %s175_s5 = sshll.u32 %s406_s3, 4  ;;  %s176_s5 = int_to_ptr.hbm [resolvable:$true] %s175_s5 }
  0x10   :  { %146 = vmatpush.bf16.msra.mxu0 %v238_v0  ;;  %239 = vmatpush.bf16.msra.mxu1 %v238_v0  ;;  %v236_v2 = vld [vmem:[#allocation5 + $0x28] sm:$0xff]  ;;  %v235_v3 = vld [vmem:[#allocation5 + $0x20] sm:$0xff]  ;;  %v234_v4 = vld [vmem:[#allocation5 + $0x18] sm:$0xff]  ;;  %s173_s2 = sshll.u32 %s364_s0, 4  ;;  %s174_s2 = int_to_ptr.vmem [resolvable:$true] %s173_s2 }
  0x11   :  { %v233_v5 = vld [vmem:[#allocation5 + $0x10] sm:$0xff]  ;;  %v232_v6 = vld [vmem:[#allocation5 + $0x8] sm:$0xff]  ;;  %v231_v7 = vld [vmem:[#allocation5] sm:$0xff] }
  0x12   :  { %v229_v8 = vld [vmem:[#allocation2] sm:$0xff]  ;;  %v230_v9 = vld [vmem:[#allocation2 + $0x8] sm:$0xff]  ;;  %v82_v10 = vld [vmem:[#allocation7] sm:$0xff] }
  0x13   :  { %v84_v11 = vld [vmem:[#allocation7 + $0x10] sm:$0xff]  ;;  %v83_v16 = vld [vmem:[#allocation7 + $0x8] sm:$0xff]  ;;  %v85_v17 = vld [vmem:[#allocation7 + $0x18] sm:$0xff] }
  0x14   :  { %147 = vmatpush.bf16.msra.mxu0 %v237_v1  ;;  %240 = vmatpush.bf16.msra.mxu1 %v237_v1 }
  0x18   :  { %148 = vmatpush.bf16.msra.mxu0 %v236_v2  ;;  %241 = vmatpush.bf16.msra.mxu1 %v236_v2 }
  0x1c   :  { %149 = vmatpush.bf16.msra.mxu0 %v235_v3  ;;  %242 = vmatpush.bf16.msra.mxu1 %v235_v3 }
  0x20   :  { %150 = vmatpush.bf16.msra.mxu0 %v234_v4  ;;  %243 = vmatpush.bf16.msra.mxu1 %v234_v4 }
  0x24   :  { %151 = vmatpush.bf16.msra.mxu0 %v233_v5  ;;  %244 = vmatpush.bf16.msra.mxu1 %v233_v5 }
  0x28   :  { %152 = vmatpush.bf16.msra.mxu0 %v232_v6  ;;  %245 = vmatpush.bf16.msra.mxu1 %v232_v6 }
  0x2c   :  { %153 = vmatpush.bf16.msra.mxu0 %v231_v7  ;;  %246 = vmatpush.bf16.msra.mxu1 %v231_v7 }
  0x2f   :  { %154 = vmatmul.bf16.vlgmr.msra.gmra.mxu0 %v229_v8  ;;  %159 = vmatmul.bf16.vlgmr.msra.gmra.mxu1 %v230_v9 }
  0xac   :  { %v155_v12 = vpop.f32.mrf.mxu0  ;;  %v160_v13 = vpop.f32.mrf.mxu1 }
  0xad   :  { %v156_v14 = vadd.f32 %v155_v12, %v82_v10  ;;  %v161_v15 = vadd.f32 %v160_v13, %v84_v11 }
  0xaf   :  { %165 = vst [vmem:[#allocation8] sm:$0xff] %v156_v14 }
  0xb0   :  { %167 = vst [vmem:[#allocation8 + $0x10] sm:$0xff] %v161_v15 }
  0xb4   :  { %v157_v18 = vpop.f32.mrf.mxu0  ;;  %v162_v19 = vpop.f32.mrf.mxu1 }
  0xb5   :  { %v158_v20 = vadd.f32 %v157_v18, %v83_v16  ;;  %v163_v21 = vadd.f32 %v162_v19, %v85_v17 }
  0xb7   :  { %166 = vst [vmem:[#allocation8 + $0x8] sm:$0xff] %v158_v20 }
  0xb8   :  { %168 = vst [vmem:[#allocation8 + $0x18] sm:$0xff] %v163_v21 }
  0xb9   :  { %181 = dma.vmem_to_hbm [thread:$0]  %s174_s2, 512, %s176_s5, [#allocation4], %s362_s28, %s362_s28, %s363_s29  }
  0xba   :  { %355 = dma.done.wait [#allocation4], 512  }
  0xbb   :  { %356 = vsyncadd [#allocation4], 4294966784 }
  0xbc   :  { %186 = vsyncpa [#allocation3], 1 }
  0xbd   :  { %187 = vsyncpa [#allocation6], 1 }
  0xbe   :  { %188 = vsyncpa [#allocation4], 1 }

</bundles_post_ra>
